<compile_context>
chip_gen: v7x
topology: tpu7x:2x2x1
jax: 0.10.0
libtpu: 0.0.40
codegen_flags: <defaults>
</compile_context>

<pallas_src>
import jax
import jax.numpy as jnp
from jax.experimental import pallas as pl
from jax.experimental.pallas import tpu as pltpu

_LANE = 128
_SUBLANE = 8
_TARGET_BLOCK_BYTES = 2 * 1024 * 1024      # ~2 MiB per input block
_VMEM_BUDGET_BYTES = 48 * 1024 * 1024      # safe on v7x (64 MiB physical)


def _choose_tile_rows(rows8, num_stages, itemsize):
    """Pick a row-tile size (multiple of 8) targeting MiB-scale blocks while
    keeping (S+1) double-buffered input blocks inside the VMEM budget, and
    preferring a divisor of rows8 so no extra padding is needed."""
    bytes_per_row = _LANE * itemsize
    tr = _TARGET_BLOCK_BYTES // bytes_per_row
    # Leave ~half the budget for f32 temporaries / outputs / headroom.
    cap = (_VMEM_BUDGET_BYTES // 2) // ((num_stages + 1) * 2 * bytes_per_row)
    tr = max(_SUBLANE, min(tr, cap))
    tr = (tr // _SUBLANE) * _SUBLANE
    if rows8 <= tr:
        return rows8
    # Prefer a divisor of rows8 (multiple of 8) to avoid padding whole tiles.
    lo = max(_SUBLANE, (tr // 4) // _SUBLANE * _SUBLANE)
    for cand in range(tr, lo - 1, -_SUBLANE):
        if rows8 % cand == 0:
            return cand
    return tr  # will pad up to a whole number of tiles


def _make_kernel(num_stages, tile_rows):
    """Ref order: (y_ref, x_0 .. x_{S-1}, out_0 .. out_{S-1})."""
    groups = tile_rows // _SUBLANE

    def kernel(*refs):
        y_ref = refs[0]
        x_refs = refs[1:1 + num_stages]
        o_refs = refs[1 + num_stages:]

        # Y tile is loaded once and reused across all stages.
        y = y_ref[...].astype(jnp.float32)                         # (TR, 128)
        for s in range(num_stages):
            d = x_refs[s][...].astype(jnp.float32) - y             # (TR, 128)
            dsq = d * d
            # Sublane-group partial reduce: pure vreg adds, result stays one
            # vreg-shaped (8, 128) slab; full 128-lane-dense store.
            part = jnp.sum(dsq.reshape(groups, _SUBLANE, _LANE), axis=0)
            o_refs[s][...] = part.reshape(1, _SUBLANE, _LANE)

    return kernel


def mutilstage_loss(X, Y):
    """X: list/tuple of arrays, each the same shape as Y (e.g. (B, C, H, W)).
    Returns a scalar: sum over stages of sqrt(MSE(x, Y))."""
    S = len(X)
    assert S >= 1
    for x in X:
        assert x.shape == Y.shape
    n = int(Y.size)
    itemsize = jnp.dtype(Y.dtype).itemsize

    # Lane-dense (rows, 128) slab layout, row axis tiled.
    rows = -(-n // _LANE)                                  # ceil(n / 128)
    rows8 = -(-rows // _SUBLANE) * _SUBLANE                # sublane multiple
    tile_rows = _choose_tile_rows(rows8, S, itemsize)
    num_tiles = -(-rows8 // tile_rows)
    rows_padded = num_tiles * tile_rows
    total = rows_padded * _LANE

    def to_slab(a):
        flat = a.reshape(-1)
        if flat.size != total:
            # Pad X and Y identically with zeros -> padded diff is exactly 0.
            flat = jnp.pad(flat, (0, total - flat.size))
        return flat.reshape(rows_padded, _LANE)

    y_slab = to_slab(Y)
    x_slabs = [to_slab(x) for x in X]

    # VMEM budget: (S+1) double-buffered input blocks + f32 temps + outputs.
    in_block_bytes = tile_rows * _LANE * itemsize
    vmem_est = (S + 1) * 2 * in_block_bytes
    vmem_est += 3 * tile_rows * _LANE * 4                   # f32 y / d / d*d temps
    vmem_est += S * 2 * _SUBLANE * _LANE * 4                # output windows
    vmem_limit = int(min(_VMEM_BUDGET_BYTES,
                         max(vmem_est + (8 << 20), 32 << 20)))

    kernel = _make_kernel(S, tile_rows)

    in_specs = [pl.BlockSpec((tile_rows, _LANE), lambda i: (i, 0))
                for _ in range(S + 1)]
    out_specs = tuple(pl.BlockSpec((1, _SUBLANE, _LANE), lambda i: (i, 0, 0))
                      for _ in range(S))
    out_shape = tuple(jax.ShapeDtypeStruct((num_tiles, _SUBLANE, _LANE),
                                           jnp.float32)
                      for _ in range(S))

    partials = pl.pallas_call(
        kernel,
        out_shape=out_shape,
        grid_spec=pltpu.PrefetchScalarGridSpec(
            num_scalar_prefetch=0,
            grid=(num_tiles,),
            in_specs=in_specs,
            out_specs=out_specs,
        ),
        compiler_params=pltpu.CompilerParams(
            dimension_semantics=("parallel",),   # no cross-step state
            vmem_limit_bytes=vmem_limit,
        ),
    )(y_slab, *x_slabs)

    # Finalize in the wrapper: tiny (num_tiles, 8, 128) partials per stage.
    inv_n = 1.0 / n
    loss = jnp.float32(0.0)
    for p in partials:
        loss = loss + jnp.sqrt(jnp.sum(p) * inv_n)
    return loss


def _reference(X, Y):
    loss = jnp.float32(0.0)
    yf = Y.astype(jnp.float32)
    for x in X:
        loss += jnp.sqrt(jnp.mean((x.astype(jnp.float32) - yf) ** 2))
    return loss


if __name__ == "__main__":
    key = jax.random.PRNGKey(0)
    B, C, H, W = 2, 4, 16, 16          # N = 2048 = 16 * 128
    S = 3                              # number of prediction stages

    keys = jax.random.split(key, S + 1)
    X = [jax.random.normal(keys[i], (B, C, H, W), dtype=jnp.float32) for i in range(S)]
    Y = jax.random.normal(keys[S], (B, C, H, W), dtype=jnp.float32)

    loss = mutilstage_loss(X, Y)
    jax.block_until_ready(loss)

    ref = _reference(X, Y)
    assert jnp.allclose(loss, ref, rtol=1e-5, atol=1e-5), (loss, ref)

    print("KERNEL_OK")
</pallas_src>

<mosaic_0001>
module attributes {stable_mosaic.version = 11 : i64} {
  func.func @kernel(%arg0: i32, %arg1: memref<16x128xf32, #tpu.memory_space<vmem>>, %arg2: memref<16x128xf32, #tpu.memory_space<vmem>>, %arg3: memref<16x128xf32, #tpu.memory_space<vmem>>, %arg4: memref<16x128xf32, #tpu.memory_space<vmem>>, %arg5: memref<1x8x128xf32, #tpu.memory_space<vmem>>, %arg6: memref<1x8x128xf32, #tpu.memory_space<vmem>>, %arg7: memref<1x8x128xf32, #tpu.memory_space<vmem>>) attributes {dimension_semantics = [#tpu.dimension_semantics<parallel>], iteration_bounds = array<i64: 1>, scalar_prefetch = 0 : i64, scratch_operands = 0 : i64, tpu.core_type = #tpu.core_type<tc>, window_params = [{transform_indices = @transform_0, window_bounds = array<i64: 16, 128>}, {transform_indices = @transform_1, window_bounds = array<i64: 16, 128>}, {transform_indices = @transform_2, window_bounds = array<i64: 16, 128>}, {transform_indices = @transform_3, window_bounds = array<i64: 16, 128>}, {transform_indices = @transform_4, window_bounds = array<i64: 1, 8, 128>}, {transform_indices = @transform_5, window_bounds = array<i64: 1, 8, 128>}, {transform_indices = @transform_6, window_bounds = array<i64: 1, 8, 128>}]} {
    %c0 = arith.constant 0 : index
    %c0_0 = arith.constant 0 : index
    %0 = vector.load %arg1[%c0, %c0_0] : memref<16x128xf32, #tpu.memory_space<vmem>>, vector<16x128xf32>
    %c0_1 = arith.constant 0 : index
    %c0_2 = arith.constant 0 : index
    %1 = vector.load %arg2[%c0_1, %c0_2] : memref<16x128xf32, #tpu.memory_space<vmem>>, vector<16x128xf32>
    %2 = arith.subf %1, %0 : vector<16x128xf32>
    %3 = arith.mulf %2, %2 : vector<16x128xf32>
    %4 = vector.shape_cast %3 : vector<16x128xf32> to vector<2x8x128xf32>
    %cst = arith.constant dense<0.000000e+00> : vector<8x128xf32>
    %5 = vector.multi_reduction <add>, %4, %cst [0] : vector<2x8x128xf32> to vector<8x128xf32>
    %6 = vector.shape_cast %5 : vector<8x128xf32> to vector<1x8x128xf32>
    %c0_3 = arith.constant 0 : index
    %c0_4 = arith.constant 0 : index
    %c0_5 = arith.constant 0 : index
    %7 = vector.load %arg5[%c0_3, %c0_4, %c0_5] : memref<1x8x128xf32, #tpu.memory_space<vmem>>, vector<1x8x128xf32>
    tpu.vector_store %arg5[%c0_3, %c0_4, %c0_5], %6 {strides = array<i32>} : memref<1x8x128xf32, #tpu.memory_space<vmem>>, vector<1x8x128xf32>,
    %c0_6 = arith.constant 0 : index
    %c0_7 = arith.constant 0 : index
    %8 = vector.load %arg3[%c0_6, %c0_7] : memref<16x128xf32, #tpu.memory_space<vmem>>, vector<16x128xf32>
    %9 = arith.subf %8, %0 : vector<16x128xf32>
    %10 = arith.mulf %9, %9 : vector<16x128xf32>
    %11 = vector.shape_cast %10 : vector<16x128xf32> to vector<2x8x128xf32>
    %cst_8 = arith.constant dense<0.000000e+00> : vector<8x128xf32>
    %12 = vector.multi_reduction <add>, %11, %cst_8 [0] : vector<2x8x128xf32> to vector<8x128xf32>
    %13 = vector.shape_cast %12 : vector<8x128xf32> to vector<1x8x128xf32>
    %c0_9 = arith.constant 0 : index
    %c0_10 = arith.constant 0 : index
    %c0_11 = arith.constant 0 : index
    %14 = vector.load %arg6[%c0_9, %c0_10, %c0_11] : memref<1x8x128xf32, #tpu.memory_space<vmem>>, vector<1x8x128xf32>
    tpu.vector_store %arg6[%c0_9, %c0_10, %c0_11], %13 {strides = array<i32>} : memref<1x8x128xf32, #tpu.memory_space<vmem>>, vector<1x8x128xf32>,
    %c0_12 = arith.constant 0 : index
    %c0_13 = arith.constant 0 : index
    %15 = vector.load %arg4[%c0_12, %c0_13] : memref<16x128xf32, #tpu.memory_space<vmem>>, vector<16x128xf32>
    %16 = arith.subf %15, %0 : vector<16x128xf32>
    %17 = arith.mulf %16, %16 : vector<16x128xf32>
    %18 = vector.shape_cast %17 : vector<16x128xf32> to vector<2x8x128xf32>
    %cst_14 = arith.constant dense<0.000000e+00> : vector<8x128xf32>
    %19 = vector.multi_reduction <add>, %18, %cst_14 [0] : vector<2x8x128xf32> to vector<8x128xf32>
    %20 = vector.shape_cast %19 : vector<8x128xf32> to vector<1x8x128xf32>
    %c0_15 = arith.constant 0 : index
    %c0_16 = arith.constant 0 : index
    %c0_17 = arith.constant 0 : index
    %21 = vector.load %arg7[%c0_15, %c0_16, %c0_17] : memref<1x8x128xf32, #tpu.memory_space<vmem>>, vector<1x8x128xf32>
    tpu.vector_store %arg7[%c0_15, %c0_16, %c0_17], %20 {strides = array<i32>} : memref<1x8x128xf32, #tpu.memory_space<vmem>>, vector<1x8x128xf32>,
    return
  }
  func.func @transform_0(%arg0: i32) -> (i32, i32) {
    %c0_i32 = arith.constant 0 : i32
    %c0_i32_0 = arith.constant 0 : i32
    return %arg0, %c0_i32 : i32, i32
  }
  func.func @transform_1(%arg0: i32) -> (i32, i32) {
    %c0_i32 = arith.constant 0 : i32
    %c0_i32_0 = arith.constant 0 : i32
    return %arg0, %c0_i32 : i32, i32
  }
  func.func @transform_2(%arg0: i32) -> (i32, i32) {
    %c0_i32 = arith.constant 0 : i32
    %c0_i32_0 = arith.constant 0 : i32
    return %arg0, %c0_i32 : i32, i32
  }
  func.func @transform_3(%arg0: i32) -> (i32, i32) {
    %c0_i32 = arith.constant 0 : i32
    %c0_i32_0 = arith.constant 0 : i32
    return %arg0, %c0_i32 : i32, i32
  }
  func.func @transform_4(%arg0: i32) -> (i32, i32, i32) {
    %c0_i32 = arith.constant 0 : i32
    %c0_i32_0 = arith.constant 0 : i32
    %c0_i32_1 = arith.constant 0 : i32
    return %arg0, %c0_i32, %c0_i32_0 : i32, i32, i32
  }
  func.func @transform_5(%arg0: i32) -> (i32, i32, i32) {
    %c0_i32 = arith.constant 0 : i32
    %c0_i32_0 = arith.constant 0 : i32
    %c0_i32_1 = arith.constant 0 : i32
    return %arg0, %c0_i32, %c0_i32_0 : i32, i32, i32
  }
  func.func @transform_6(%arg0: i32) -> (i32, i32, i32) {
    %c0_i32 = arith.constant 0 : i32
    %c0_i32_0 = arith.constant 0 : i32
    %c0_i32_1 = arith.constant 0 : i32
    return %arg0, %c0_i32, %c0_i32_0 : i32, i32, i32
  }
}

</mosaic_0001>

<bundles_post_ra>
// kernel: tpu_custom_call.1
= control target key start
LH: loop header
LB: loop body
LE: loop exit
PB: predicated region body
PF: predicated region fallthrough
CT: control target
= control target key end

     0   :  { %12 = vsyncpa [#allocation3], 0  ;;  %s488_s0 = inlined_call_operand.hbm [shape: f32[16,128], index: 0, kind: input, shape index: {}]   ;;  %s489_s1 = inlined_call_operand.hbm [shape: f32[16,128], index: 1, kind: input, shape index: {}]   ;;  %s490_s2 = inlined_call_operand.hbm [shape: f32[16,128], index: 2, kind: input, shape index: {}]   ;;  %s491_s3 = inlined_call_operand.hbm [shape: f32[16,128], index: 3, kind: input, shape index: {}]   ;;  %s492_s4 = inlined_call_operand.hbm [shape: f32[1,8,128], index: 4, kind: output, shape index: {0}]   ;;  %s493_s5 = inlined_call_operand.hbm [shape: f32[1,8,128], index: 5, kind: output, shape index: {1}]   ;;  %s494_s6 = inlined_call_operand.hbm [shape: f32[1,8,128], index: 6, kind: output, shape index: {2}]  }
   0x1   :  { %13 = vsyncpa [#allocation6], 0 }
   0x2   :  { %14 = vsyncpa [#allocation9], 0 }
   0x3   :  { %15 = vsyncpa [#allocation4], 0 }
   0x4   :  { %16 = vsyncpa [#allocation12], 0  ;;  %s320_s21 = smov [#allocation5]   ;;  %s321_s23 = smov [#allocation2]  }
   0x5   :  { %s34_s22 = sshll.u32 %s320_s21, 4  ;;  %s22_s24 = sshll.u32 %s321_s23, 4  ;;  %s35_s22 = int_to_ptr.vmem [resolvable:$true] %s34_s22  ;;  %s364_s24 = int_to_ptr.vmem [resolvable:$true] %s22_s24 }
   0x6   :  { %s156_s27 = scalar_lea.hbm %s489_s1, 256 }
   0x7   :  { %p157_p0 = scmp.ne.s32.totalorder %s489_s1, %s156_s27  ;;  %p160_p1 = scmp.lt.u32.totalorder %s156_s27, %s489_s1 }
   0x9   :  { %p162_p2 = pnand %p160_p1, %p157_p0 }
   0xb   :  { %165 = shalt.err (!%p162_p2)
}
   0xc   :  { %s166_s8 = scalar_lea.vmem %s35_s22, 256  ;;  %p171_p4 = scmp.lt.s32.totalorder %s35_s22, %s35_s22 }
   0xd   :  { %p167_p3 = scmp.ne.s32.totalorder %s35_s22, %s166_s8  ;;  %p172_p5 = scmp.lt.s32.totalorder %s166_s8, %s166_s8 }
   0xf   :  { %p173_p6 = por %p172_p5, %p171_p4 }
  0x11   :  { %p174_p7 = pnand %p173_p6, %p167_p3 }
  0x13   :  { %177 = shalt.err (!%p174_p7)
}
  0x14   :  { %s322_s9 = smov 128   ;;  %s323_s10 = smov 8  }
  0x15   :  { %40 = dma.hbm_to_vmem [thread:$0]  %s489_s1, 256, %s35_s22, [#allocation6], %s322_s9, %s322_s9, %s323_s10  }
  0x16   :  { %s178_s15 = scalar_lea.hbm %s488_s0, 256 }
  0x17   :  { %p179_p8 = scmp.ne.s32.totalorder %s488_s0, %s178_s15  ;;  %p182_p9 = scmp.lt.u32.totalorder %s178_s15, %s488_s0 }
  0x19   :  { %p184_p10 = pnand %p182_p9, %p179_p8 }
  0x1b   :  { %187 = shalt.err (!%p184_p10)
}
  0x1c   :  { %s188_s20 = scalar_lea.vmem %s364_s24, 256  ;;  %p193_p12 = scmp.lt.s32.totalorder %s364_s24, %s364_s24 }
  0x1d   :  { %p189_p11 = scmp.ne.s32.totalorder %s364_s24, %s188_s20  ;;  %p194_p13 = scmp.lt.s32.totalorder %s188_s20, %s188_s20 }
  0x1f   :  { %p195_p0 = por %p194_p13, %p193_p12 }
  0x21   :  { %p196_p1 = pnand %p195_p0, %p189_p11 }
  0x23   :  { %199 = shalt.err (!%p196_p1)
}
  0x24   :  { %28 = dma.hbm_to_vmem [thread:$0]  %s488_s0, 256, %s364_s24, [#allocation3], %s322_s9, %s322_s9, %s323_s10  }
  0x25   :  { %s324_s22 = smov [#allocation7]   ;;  %s325_s25 = smov [#allocation8]  }
  0x26   :  { %s46_s23 = sshll.u32 %s324_s22, 4  ;;  %s58_s26 = sshll.u32 %s325_s25, 4  ;;  %s47_s23 = int_to_ptr.vmem [resolvable:$true] %s46_s23  ;;  %s401_s26 = int_to_ptr.vmem [resolvable:$true] %s58_s26 }
  0x27   :  { %s200_s29 = scalar_lea.hbm %s490_s2, 256 }
  0x28   :  { %p201_p2 = scmp.ne.s32.totalorder %s490_s2, %s200_s29  ;;  %p204_p3 = scmp.lt.u32.totalorder %s200_s29, %s490_s2 }
  0x2a   :  { %p206_p4 = pnand %p204_p3, %p201_p2 }
  0x2c   :  { %209 = shalt.err (!%p206_p4)
}
  0x2d   :  { %s210_s0 = scalar_lea.vmem %s47_s23, 256  ;;  %p215_p6 = scmp.lt.s32.totalorder %s47_s23, %s47_s23 }
  0x2e   :  { %p211_p5 = scmp.ne.s32.totalorder %s47_s23, %s210_s0  ;;  %p216_p7 = scmp.lt.s32.totalorder %s210_s0, %s210_s0 }
  0x30   :  { %p217_p8 = por %p216_p7, %p215_p6 }
  0x32   :  { %p218_p9 = pnand %p217_p8, %p211_p5 }
  0x34   :  { %221 = shalt.err (!%p218_p9)
}
  0x35   :  { %52 = dma.hbm_to_vmem [thread:$0]  %s490_s2, 256, %s47_s23, [#allocation6], %s322_s9, %s322_s9, %s323_s10  }
  0x36   :  { %s222_s15 = scalar_lea.hbm %s491_s3, 256 }
  0x37   :  { %p223_p10 = scmp.ne.s32.totalorder %s491_s3, %s222_s15  ;;  %p226_p11 = scmp.lt.u32.totalorder %s222_s15, %s491_s3 }
  0x39   :  { %p228_p12 = pnand %p226_p11, %p223_p10 }
  0x3b   :  { %231 = shalt.err (!%p228_p12)
}
  0x3c   :  { %s232_s20 = scalar_lea.vmem %s401_s26, 256  ;;  %p237_p0 = scmp.lt.s32.totalorder %s401_s26, %s401_s26 }
  0x3d   :  { %p233_p13 = scmp.ne.s32.totalorder %s401_s26, %s232_s20  ;;  %p238_p1 = scmp.lt.s32.totalorder %s232_s20, %s232_s20 }
  0x3f   :  { %p239_p2 = por %p238_p1, %p237_p0 }
  0x41   :  { %p240_p3 = pnand %p239_p2, %p233_p13 }
  0x43   :  { %243 = shalt.err (!%p240_p3)
}
  0x44   :  { %64 = dma.hbm_to_vmem [thread:$0]  %s491_s3, 256, %s401_s26, [#allocation9], %s322_s9, %s322_s9, %s323_s10  }
  0x45   :  { %310 = dma.done.wait [#allocation3], 256  }
  0x46   :  { %311 = vsyncadd [#allocation3], 4294967040 }
  0x47   :  { %312 = dma.done.wait [#allocation6], 512  }
  0x48   :  { %313 = vsyncadd [#allocation6], 4294966784 }
  0x49   :  { %314 = dma.done.wait [#allocation9], 256  }
  0x4a   :  { %315 = vsyncadd [#allocation9], 4294967040  ;;  %v77_v0 = vld [vmem:[#allocation2] sm:$0xff]  ;;  %v78_v1 = vld [vmem:[#allocation2 + $0x8] sm:$0xff]  ;;  %s326_s3 = smov [#allocation11]   ;;  %s327_s10 = smov [#allocation10]  }
  0x4b   :  { %v87_v2 = vld [vmem:[#allocation7] sm:$0xff]  ;;  %v88_v3 = vld [vmem:[#allocation7 + $0x8] sm:$0xff]  ;;  %v79_v5 = vld [vmem:[#allocation5] sm:$0xff]  ;;  %s119_s9 = sshll.u32 %s326_s3, 4  ;;  %s109_s21 = sshll.u32 %s327_s10, 4  ;;  %s120_s9 = int_to_ptr.vmem [resolvable:$true] %s119_s9  ;;  %s438_s21 = int_to_ptr.vmem [resolvable:$true] %s109_s21 }
  0x4c   :  { %v89_v4 = vsub.f32 %v87_v2, %v77_v0  ;;  %v80_v6 = vld [vmem:[#allocation5 + $0x8] sm:$0xff]  ;;  %v90_v7 = vsub.f32 %v88_v3, %v78_v1  ;;  %v81_v8 = vsub.f32 %v79_v5, %v77_v0  ;;  %v95_v10 = vld [vmem:[#allocation8] sm:$0xff]  ;;  %s328_s22 = smov [#allocation13]   ;;  %s244_s25 = scalar_lea.vmem %s120_s9, 128 }
  0x4d   :  { %v82_v9 = vsub.f32 %v80_v6, %v78_v1  ;;  %v96_v11 = vld [vmem:[#allocation8 + $0x8] sm:$0xff]  ;;  %v97_v13 = vsub.f32 %v95_v10, %v77_v0  ;;  %s129_s23 = sshll.u32 %s328_s22, 4  ;;  %p245_p4 = scmp.ne.s32.totalorder %s120_s9, %s244_s25  ;;  %s440_s23 = int_to_ptr.vmem [resolvable:$true] %s129_s23 }
  0x4e   :  { %v91_v12 = vmul.f32 %v89_v4, %v89_v4  ;;  %v98_v14 = vsub.f32 %v96_v11, %v78_v1  ;;  %v92_v15 = vmul.f32 %v90_v7, %v90_v7  ;;  %v83_v16 = vmul.f32 %v81_v8, %v81_v8  ;;  %p249_p5 = scmp.lt.s32.totalorder %s120_s9, %s120_s9  ;;  %p250_p6 = scmp.lt.s32.totalorder %s244_s25, %s244_s25 }
  0x4f   :  { %v84_v17 = vmul.f32 %v82_v9, %v82_v9  ;;  %v99_v18 = vmul.f32 %v97_v13, %v97_v13 }
  0x50   :  { %v100_v19 = vmul.f32 %v98_v14, %v98_v14  ;;  %v93_v20 = vadd.f32 %v92_v15, %v91_v12  ;;  %p251_p7 = por %p250_p6, %p249_p5 }
  0x51   :  { %v85_v21 = vadd.f32 %v84_v17, %v83_v16 }
  0x52   :  { %v101_v22 = vadd.f32 %v100_v19, %v99_v18  ;;  %94 = vst [vmem:[#allocation11] sm:$0xff] %v93_v20  ;;  %p252_p8 = pnand %p251_p7, %p245_p4 }
  0x53   :  { %86 = vst [vmem:[#allocation10] sm:$0xff] %v85_v21 }
  0x54   :  { %102 = vst [vmem:[#allocation13] sm:$0xff] %v101_v22 }
  0x55   :  { %255 = shalt.err (!%p252_p8)
}
  0x56   :  { %s256_s28 = scalar_lea.hbm %s493_s5, 128 }
  0x57   :  { %p257_p9 = scmp.ne.s32.totalorder %s493_s5, %s256_s28  ;;  %p260_p10 = scmp.lt.u32.totalorder %s256_s28, %s493_s5 }
  0x59   :  { %p262_p11 = pnand %p260_p10, %p257_p9 }
  0x5b   :  { %265 = shalt.err (!%p262_p11)
}
  0x5c   :  { %122 = dma.vmem_to_hbm [thread:$0]  %s120_s9, 128, %s493_s5, [#allocation12]  }
  0x5d   :  { %s266_s24 = scalar_lea.vmem %s438_s21, 128  ;;  %p271_p13 = scmp.lt.s32.totalorder %s438_s21, %s438_s21 }
  0x5e   :  { %p267_p12 = scmp.ne.s32.totalorder %s438_s21, %s266_s24  ;;  %p272_p0 = scmp.lt.s32.totalorder %s266_s24, %s266_s24 }
  0x60   :  { %p273_p1 = por %p272_p0, %p271_p13 }
  0x62   :  { %p274_p2 = pnand %p273_p1, %p267_p12 }
  0x64   :  { %277 = shalt.err (!%p274_p2)
}
  0x65   :  { %s278_s14 = scalar_lea.hbm %s492_s4, 128 }
  0x66   :  { %p279_p3 = scmp.ne.s32.totalorder %s492_s4, %s278_s14  ;;  %p282_p4 = scmp.lt.u32.totalorder %s278_s14, %s492_s4 }
  0x68   :  { %p284_p5 = pnand %p282_p4, %p279_p3 }
  0x6a   :  { %287 = shalt.err (!%p284_p5)
}
  0x6b   :  { %112 = dma.vmem_to_hbm [thread:$0]  %s438_s21, 128, %s492_s4, [#allocation4]  }
  0x6c   :  { %s288_s20 = scalar_lea.vmem %s440_s23, 128  ;;  %p293_p7 = scmp.lt.s32.totalorder %s440_s23, %s440_s23 }
  0x6d   :  { %p289_p6 = scmp.ne.s32.totalorder %s440_s23, %s288_s20  ;;  %p294_p8 = scmp.lt.s32.totalorder %s288_s20, %s288_s20 }
  0x6f   :  { %p295_p9 = por %p294_p8, %p293_p7 }
  0x71   :  { %p296_p10 = pnand %p295_p9, %p289_p6 }
  0x73   :  { %299 = shalt.err (!%p296_p10)
}
  0x74   :  { %s300_s3 = scalar_lea.hbm %s494_s6, 128 }
  0x75   :  { %p301_p11 = scmp.ne.s32.totalorder %s494_s6, %s300_s3  ;;  %p304_p12 = scmp.lt.u32.totalorder %s300_s3, %s494_s6 }
  0x77   :  { %p306_p13 = pnand %p304_p12, %p301_p11 }
  0x79   :  { %309 = shalt.err (!%p306_p13)
}
  0x7a   :  { %132 = dma.vmem_to_hbm [thread:$0]  %s440_s23, 128, %s494_s6, [#allocation12]  }
  0x7b   :  { %316 = dma.done.wait [#allocation4], 128  }
  0x7c   :  { %317 = vsyncadd [#allocation4], 4294967168 }
  0x7d   :  { %318 = dma.done.wait [#allocation12], 256  }
  0x7e   :  { %319 = vsyncadd [#allocation12], 4294967040 }
  0x7f   :  { %142 = vsyncpa [#allocation3], 1 }
  0x80   :  { %143 = vsyncpa [#allocation6], 1 }
  0x81   :  { %144 = vsyncpa [#allocation9], 1 }
  0x82   :  { %145 = vsyncpa [#allocation4], 1 }
  0x83   :  { %146 = vsyncpa [#allocation12], 1 }

</bundles_post_ra>
